<compile_context>
chip_gen: v7x
topology: tpu7x:2x2x1
jax: 0.10.0
libtpu: 0.0.40
codegen_flags: <defaults>
</compile_context>

<pallas_src>
import functools

import jax
import jax.numpy as jnp
from jax.experimental import pallas as pl
from jax.experimental.pallas import tpu as pltpu

_SUBLANE = 8  # f32 sublane count


def _round_up(n, m):
    return ((n + m - 1) // m) * m


# ----------------------------------------------------------------------------
# Pallas kernel: entire IncrementalNet forward (backbone MLP + fc head) fused.
# One batch tile per grid step; weights/biases are VMEM-resident.
# Note: for a partial edge batch block, rows past B contain unspecified data,
# but the matmuls contract over K only, so garbage stays confined to those
# rows and Pallas masks them on the HBM write.  Do NOT reduce over the batch
# axis inside this kernel.
# ----------------------------------------------------------------------------
def _incnet_kernel(x_ref, w1_ref, b1_ref, w2_ref, b2_ref, wf_ref, bf_ref,
                   feat_ref, logits_ref):
    x = x_ref[...]                                                    # (TB, D_in)

    # convnet (generalize + specialize ANN blocks): two Linear+ReLU layers
    h1 = jnp.dot(x, w1_ref[...], preferred_element_type=jnp.float32)
    h1 = jnp.maximum(h1 + b1_ref[...], 0.0)                           # (TB, H1)

    h2 = jnp.dot(h1, w2_ref[...], preferred_element_type=jnp.float32)
    h2 = jnp.maximum(h2 + b2_ref[...], 0.0)                           # (TB, H2)

    feat_ref[...] = h2.astype(feat_ref.dtype)                         # 'features'

    # fc head (SimpleLinear): logits = features @ Wf + bf  (reuse h2 in-reg)
    logits = jnp.dot(h2, wf_ref[...], preferred_element_type=jnp.float32)
    logits_ref[...] = (logits + bf_ref[...]).astype(logits_ref.dtype)  # 'logits'


@functools.partial(jax.jit, static_argnames=("block_b",))
def incremental_net_forward(x, params, *, block_b=4096):
    """IncrementalNet.forward; returns dict with 'logits' and 'features'."""
    w1, b1, w2, b2, wf, bf = (params["w1"], params["b1"], params["w2"],
                              params["b2"], params["wf"], params["bf"])
    B, D_in = x.shape
    H1 = w1.shape[1]
    H2 = w2.shape[1]
    C = wf.shape[1]

    # Batch tile: large enough to amortise per-step pipeline overhead, capped
    # at ceil(B/2) (rounded to the sublane) so medium batches produce >=2 grid
    # steps and v7x's two TensorCores both get work; small batches collapse to
    # a single tile.
    TB = max(_SUBLANE, min(block_b, _round_up(pl.cdiv(B, 2), _SUBLANE)))
    grid = (pl.cdiv(B, TB),)

    def _const_spec(shape):
        # Weights/biases: same block every grid step -> stay VMEM-resident.
        return pl.BlockSpec(shape, lambda i, _nd=len(shape): (0,) * _nd)

    def _batch_spec(cols):
        # Batch-tiled operands: block index follows the grid; last block dim
        # equals the full array dim, so no lane padding is required.
        return pl.BlockSpec((TB, cols), lambda i: (i, 0))

    flops = 2 * B * (D_in * H1 + H1 * H2 + H2 * C)
    bytes_accessed = 4 * (B * D_in + B * H2 + B * C
                          + D_in * H1 + H1 + H1 * H2 + H2 + H2 * C + C)

    feat, logits = pl.pallas_call(
        _incnet_kernel,
        out_shape=(
            jax.ShapeDtypeStruct((B, H2), jnp.float32),   # features (true width)
            jax.ShapeDtypeStruct((B, C), jnp.float32),    # logits   (true width)
        ),
        grid=grid,
        in_specs=[
            _batch_spec(D_in),
            _const_spec((D_in, H1)), _const_spec((1, H1)),
            _const_spec((H1, H2)), _const_spec((1, H2)),
            _const_spec((H2, C)), _const_spec((1, C)),
        ],
        out_specs=(
            _batch_spec(H2),
            _batch_spec(C),
        ),
        compiler_params=pltpu.CompilerParams(
            # Independent batch tiles -> shard across v7x's two TensorCores.
            dimension_semantics=("parallel",)),
        cost_estimate=pl.CostEstimate(flops=flops, transcendentals=0,
                                      bytes_accessed=bytes_accessed),
    )(x, w1, b1, w2, b2, wf, bf)

    # forward(): out = fc(features); out.update(convnet_out)
    return {"logits": logits, "features": feat}


# ----------------------------------------------------------------------------
# Deterministic parameter construction (synthetic init, no checkpoint load).
# PyTorch Linear weights (out, in) are stored pre-transposed as (in, out) so
# the kernel computes y = x @ W + b == x @ W_pt.T + b.
# ----------------------------------------------------------------------------
def init_params(key, d_in=121, h1=128, h2=64, nb_classes=10):
    ks = jax.random.split(key, 6)
    scale = lambda fan_in: 1.0 / jnp.sqrt(jnp.float32(fan_in))
    return {
        "w1": jax.random.normal(ks[0], (d_in, h1), jnp.float32) * scale(d_in),
        "b1": jax.random.normal(ks[1], (1, h1), jnp.float32) * 0.01,
        "w2": jax.random.normal(ks[2], (h1, h2), jnp.float32) * scale(h1),
        "b2": jax.random.normal(ks[3], (1, h2), jnp.float32) * 0.01,
        "wf": jax.random.normal(ks[4], (h2, nb_classes), jnp.float32) * scale(h2),
        "bf": jax.random.normal(ks[5], (1, nb_classes), jnp.float32) * 0.01,
    }


def reference_forward(x, p):
    h1 = jnp.maximum(x @ p["w1"] + p["b1"], 0.0)
    h2 = jnp.maximum(h1 @ p["w2"] + p["b2"], 0.0)
    return {"logits": h2 @ p["wf"] + p["bf"], "features": h2}


if __name__ == "__main__":
    key = jax.random.PRNGKey(0)
    kx, kp = jax.random.split(key)

    B, D_IN, H1, H2, NB_CLASSES = 8, 121, 128, 64, 10
    x = jax.random.normal(kx, (B, D_IN), jnp.float32)
    params = init_params(kp, d_in=D_IN, h1=H1, h2=H2, nb_classes=NB_CLASSES)

    out = incremental_net_forward(x, params)
    jax.block_until_ready(out)

    ref = reference_forward(x, params)
    assert out["features"].shape == (B, H2)
    assert out["logits"].shape == (B, NB_CLASSES)
    assert jnp.allclose(out["features"], ref["features"], atol=1e-5, rtol=1e-5)
    assert jnp.allclose(out["logits"], ref["logits"], atol=1e-5, rtol=1e-5)

    print("KERNEL_OK")
</pallas_src>

<mosaic_0001>
module attributes {stable_mosaic.version = 11 : i64} {
  func.func @_incnet_kernel(%arg0: i32, %arg1: memref<8x121xf32, #tpu.memory_space<vmem>>, %arg2: memref<121x128xf32, #tpu.memory_space<vmem>>, %arg3: memref<1x128xf32, #tpu.memory_space<vmem>>, %arg4: memref<128x64xf32, #tpu.memory_space<vmem>>, %arg5: memref<1x64xf32, #tpu.memory_space<vmem>>, %arg6: memref<64x10xf32, #tpu.memory_space<vmem>>, %arg7: memref<1x10xf32, #tpu.memory_space<vmem>>, %arg8: memref<8x64xf32, #tpu.memory_space<vmem>>, %arg9: memref<8x10xf32, #tpu.memory_space<vmem>>) attributes {dimension_semantics = [#tpu.dimension_semantics<parallel>], iteration_bounds = array<i64: 1>, scalar_prefetch = 0 : i64, scratch_operands = 0 : i64, tpu.core_type = #tpu.core_type<tc>, window_params = [{transform_indices = @transform_0, window_bounds = array<i64: 8, 121>}, {pipeline_mode = #tpu.pipeline_mode<synchronous>, transform_indices = @transform_1, window_bounds = array<i64: 121, 128>}, {pipeline_mode = #tpu.pipeline_mode<synchronous>, transform_indices = @transform_2, window_bounds = array<i64: 1, 128>}, {pipeline_mode = #tpu.pipeline_mode<synchronous>, transform_indices = @transform_3, window_bounds = array<i64: 128, 64>}, {pipeline_mode = #tpu.pipeline_mode<synchronous>, transform_indices = @transform_4, window_bounds = array<i64: 1, 64>}, {pipeline_mode = #tpu.pipeline_mode<synchronous>, transform_indices = @transform_5, window_bounds = array<i64: 64, 10>}, {pipeline_mode = #tpu.pipeline_mode<synchronous>, transform_indices = @transform_6, window_bounds = array<i64: 1, 10>}, {transform_indices = @transform_7, window_bounds = array<i64: 8, 64>}, {transform_indices = @transform_8, window_bounds = array<i64: 8, 10>}]} {
    %c0 = arith.constant 0 : index
    %c0_0 = arith.constant 0 : index
    %0 = vector.load %arg1[%c0, %c0_0] : memref<8x121xf32, #tpu.memory_space<vmem>>, vector<8x121xf32>
    %c0_1 = arith.constant 0 : index
    %c0_2 = arith.constant 0 : index
    %1 = vector.load %arg2[%c0_1, %c0_2] : memref<121x128xf32, #tpu.memory_space<vmem>>, vector<121x128xf32>
    %cst = arith.constant dense<0.000000e+00> : vector<8x128xf32>
    %2 = tpu.matmul %0, %1, %cst {dimension_numbers = #tpu.dot_dimension_numbers<[1], [0], [0], [1], [0, 0, 1, 1], [], []>} : vector<8x121xf32>, vector<121x128xf32>, vector<8x128xf32> -> vector<8x128xf32>
    %c0_3 = arith.constant 0 : index
    %c0_4 = arith.constant 0 : index
    %3 = vector.load %arg3[%c0_3, %c0_4] : memref<1x128xf32, #tpu.memory_space<vmem>>, vector<1x128xf32>
    %4 = vector.broadcast %3 : vector<1x128xf32> to vector<8x128xf32>
    %5 = arith.addf %2, %4 : vector<8x128xf32>
    %cst_5 = arith.constant 0.000000e+00 : f32
    %6 = vector.broadcast %cst_5 : f32 to vector<8x128xf32>
    %7 = arith.maximumf %5, %6 : vector<8x128xf32>
    %c0_6 = arith.constant 0 : index
    %c0_7 = arith.constant 0 : index
    %8 = vector.load %arg4[%c0_6, %c0_7] : memref<128x64xf32, #tpu.memory_space<vmem>>, vector<128x64xf32>
    %cst_8 = arith.constant dense<0.000000e+00> : vector<8x64xf32>
    %9 = tpu.matmul %7, %8, %cst_8 {dimension_numbers = #tpu.dot_dimension_numbers<[1], [0], [0], [1], [0, 0, 1, 1], [], []>} : vector<8x128xf32>, vector<128x64xf32>, vector<8x64xf32> -> vector<8x64xf32>
    %c0_9 = arith.constant 0 : index
    %c0_10 = arith.constant 0 : index
    %10 = vector.load %arg5[%c0_9, %c0_10] : memref<1x64xf32, #tpu.memory_space<vmem>>, vector<1x64xf32>
    %11 = vector.broadcast %10 : vector<1x64xf32> to vector<8x64xf32>
    %12 = arith.addf %9, %11 : vector<8x64xf32>
    %cst_11 = arith.constant 0.000000e+00 : f32
    %13 = vector.broadcast %cst_11 : f32 to vector<8x64xf32>
    %14 = arith.maximumf %12, %13 : vector<8x64xf32>
    %c0_12 = arith.constant 0 : index
    %c0_13 = arith.constant 0 : index
    %15 = vector.load %arg8[%c0_12, %c0_13] : memref<8x64xf32, #tpu.memory_space<vmem>>, vector<8x64xf32>
    tpu.vector_store %arg8[%c0_12, %c0_13], %14 {strides = array<i32>} : memref<8x64xf32, #tpu.memory_space<vmem>>, vector<8x64xf32>,
    %c0_14 = arith.constant 0 : index
    %c0_15 = arith.constant 0 : index
    %16 = vector.load %arg6[%c0_14, %c0_15] : memref<64x10xf32, #tpu.memory_space<vmem>>, vector<64x10xf32>
    %cst_16 = arith.constant dense<0.000000e+00> : vector<8x10xf32>
    %17 = tpu.matmul %14, %16, %cst_16 {dimension_numbers = #tpu.dot_dimension_numbers<[1], [0], [0], [1], [0, 0, 1, 1], [], []>} : vector<8x64xf32>, vector<64x10xf32>, vector<8x10xf32> -> vector<8x10xf32>
    %c0_17 = arith.constant 0 : index
    %c0_18 = arith.constant 0 : index
    %18 = vector.load %arg7[%c0_17, %c0_18] : memref<1x10xf32, #tpu.memory_space<vmem>>, vector<1x10xf32>
    %19 = vector.broadcast %18 : vector<1x10xf32> to vector<8x10xf32>
    %20 = arith.addf %17, %19 : vector<8x10xf32>
    %c0_19 = arith.constant 0 : index
    %c0_20 = arith.constant 0 : index
    %21 = vector.load %arg9[%c0_19, %c0_20] : memref<8x10xf32, #tpu.memory_space<vmem>>, vector<8x10xf32>
    tpu.vector_store %arg9[%c0_19, %c0_20], %20 {strides = array<i32>} : memref<8x10xf32, #tpu.memory_space<vmem>>, vector<8x10xf32>,
    return
  }
  func.func @transform_0(%arg0: i32) -> (i32, i32) {
    %c0_i32 = arith.constant 0 : i32
    %c0_i32_0 = arith.constant 0 : i32
    return %arg0, %c0_i32 : i32, i32
  }
  func.func @transform_1(%arg0: i32) -> (i32, i32) {
    %c0_i32 = arith.constant 0 : i32
    %c0_i32_0 = arith.constant 0 : i32
    %c0_i32_1 = arith.constant 0 : i32
    return %c0_i32, %c0_i32_0 : i32, i32
  }
  func.func @transform_2(%arg0: i32) -> (i32, i32) {
    %c0_i32 = arith.constant 0 : i32
    %c0_i32_0 = arith.constant 0 : i32
    %c0_i32_1 = arith.constant 0 : i32
    return %c0_i32, %c0_i32_0 : i32, i32
  }
  func.func @transform_3(%arg0: i32) -> (i32, i32) {
    %c0_i32 = arith.constant 0 : i32
    %c0_i32_0 = arith.constant 0 : i32
    %c0_i32_1 = arith.constant 0 : i32
    return %c0_i32, %c0_i32_0 : i32, i32
  }
  func.func @transform_4(%arg0: i32) -> (i32, i32) {
    %c0_i32 = arith.constant 0 : i32
    %c0_i32_0 = arith.constant 0 : i32
    %c0_i32_1 = arith.constant 0 : i32
    return %c0_i32, %c0_i32_0 : i32, i32
  }
  func.func @transform_5(%arg0: i32) -> (i32, i32) {
    %c0_i32 = arith.constant 0 : i32
    %c0_i32_0 = arith.constant 0 : i32
    %c0_i32_1 = arith.constant 0 : i32
    return %c0_i32, %c0_i32_0 : i32, i32
  }
  func.func @transform_6(%arg0: i32) -> (i32, i32) {
    %c0_i32 = arith.constant 0 : i32
    %c0_i32_0 = arith.constant 0 : i32
    %c0_i32_1 = arith.constant 0 : i32
    return %c0_i32, %c0_i32_0 : i32, i32
  }
  func.func @transform_7(%arg0: i32) -> (i32, i32) {
    %c0_i32 = arith.constant 0 : i32
    %c0_i32_0 = arith.constant 0 : i32
    return %arg0, %c0_i32 : i32, i32
  }
  func.func @transform_8(%arg0: i32) -> (i32, i32) {
    %c0_i32 = arith.constant 0 : i32
    %c0_i32_0 = arith.constant 0 : i32
    return %arg0, %c0_i32 : i32, i32
  }
}

</mosaic_0001>

<bundles_post_ra>
// kernel: incremental_net_forward.1
= control target key start
LH: loop header
LB: loop body
LE: loop exit
PB: predicated region body
PF: predicated region fallthrough
CT: control target
= control target key end

     0   :  { %14 = vsyncpa [#allocation3], 0  ;;  %v600_v3 = vmov 0.0|0.0   ;;  %vm601_vm0 = vmmov 0   ;;  %v602_v6 = vmov 0.0   ;;  %s833_s0 = inlined_call_operand.vmem [shape: f32[8,121], index: 0, kind: input, shape index: {}]   ;;  %s834_s1 = inlined_call_operand.vmem [shape: f32[121,128], index: 1, kind: input, shape index: {}]   ;;  %s835_s2 = inlined_call_operand.vmem [shape: f32[1,128], index: 2, kind: input, shape index: {}]   ;;  %s836_s3 = inlined_call_operand.vmem [shape: f32[128,64], index: 3, kind: input, shape index: {}]   ;;  %s837_s4 = inlined_call_operand.vmem [shape: f32[1,64], index: 4, kind: input, shape index: {}]   ;;  %s838_s5 = inlined_call_operand.vmem [shape: f32[64,10], index: 5, kind: input, shape index: {}]   ;;  %s839_s6 = inlined_call_operand.vmem [shape: f32[1,10], index: 6, kind: input, shape index: {}]   ;;  %s840_s7 = inlined_call_operand.hbm [shape: f32[8,64], index: 7, kind: output, shape index: {0}]   ;;  %s841_s8 = inlined_call_operand.hbm [shape: f32[8,10], index: 8, kind: output, shape index: {1}]  }
   0x1   :  { %v31_v0 = vld [vmem:[%s834_s1] sm:$0xff]  ;;  %v32_v1 = vld [vmem:[%s834_s1 + $0x8] sm:$0xff]  ;;  %v33_v2 = vld [vmem:[%s834_s1 + $0x10] sm:$0xff]  ;;  %485 = vmatprep.subr.bf16.mxu0 %v600_v3  ;;  %510 = vmatprep.subr.bf16.mxu1 %v600_v3 }
   0x2   :  { %v486_v4 = vpack.c.bf16 %v32_v1, %v31_v0  ;;  %v34_v5 = vld [vmem:[%s834_s1 + $0x18] sm:$0xff]  ;;  %428 = vmatprep.mubr.msk.f32.mxu0 %vm601_vm0, %v602_v6  ;;  %463 = vmatprep.mubr.msk.f32.mxu1 %vm601_vm0, %v602_v6  ;;  %v35_v8 = vld [vmem:[%s834_s1 + $0x20] sm:$0xff]  ;;  %v36_v9 = vld [vmem:[%s834_s1 + $0x28] sm:$0xff] }
   0x3   :  { %v489_v7 = vpack.c.bf16 %v34_v5, %v33_v2  ;;  %v133_v10 = vld [vmem:[%s836_s3] sm:$0xff]  ;;  %v134_v11 = vld [vmem:[%s836_s3 + $0x8] sm:$0xff]  ;;  %v135_v12 = vld [vmem:[%s836_s3 + $0x10] sm:$0xff]  ;;  %v492_v13 = vpack.c.bf16 %v36_v9, %v35_v8 }
   0x4   :  { %487 = vmatpush3.bf16.msra.mxu0 %v486_v4  ;;  %v511_v14 = vpack.c.bf16 %v134_v11, %v133_v10  ;;  %v136_v15 = vld [vmem:[%s836_s3 + $0x18] sm:$0xff]  ;;  %v37_v16 = vld [vmem:[%s834_s1 + $0x30] sm:$0xff]  ;;  %v137_v19 = vld [vmem:[%s836_s3 + $0x20] sm:$0xff] }
   0x5   :  { %488 = vmatprep.subr.bf16.mxu0 %v600_v3  ;;  %v38_v17 = vld [vmem:[%s834_s1 + $0x38] sm:$0xff]  ;;  %v514_v18 = vpack.c.bf16 %v136_v15, %v135_v12  ;;  %v138_v20 = vld [vmem:[%s836_s3 + $0x28] sm:$0xff] }
   0x6   :  { %512 = vmatpush3.bf16.msra.mxu1 %v511_v14  ;;  %v495_v21 = vpack.c.bf16 %v38_v17, %v37_v16 }
   0x7   :  { %513 = vmatprep.subr.bf16.mxu1 %v600_v3 }
   0x8   :  { %490 = vmatpush3.bf16.msra.mxu0 %v489_v7 }
   0x9   :  { %491 = vmatprep.subr.bf16.mxu0 %v600_v3 }
   0xc   :  { %493 = vmatpush3.bf16.msra.mxu0 %v492_v13 }
   0xd   :  { %15 = vsyncpa [#allocation5], 0  ;;  %494 = vmatprep.subr.bf16.mxu0 %v600_v3  ;;  %v39_v22 = vld [vmem:[%s834_s1 + $0x40] sm:$0xff]  ;;  %v40_v23 = vld [vmem:[%s834_s1 + $0x48] sm:$0xff]  ;;  %515 = vmatpush3.bf16.msra.mxu1 %v514_v18  ;;  %v517_v24 = vpack.c.bf16 %v138_v20, %v137_v19  ;;  %vm58_vm1 = vcmask 1040384   ;;  %vm603_vm2 = vmmov 1  }
   0xe   :  { %516 = vmatprep.subr.bf16.mxu1 %v600_v3  ;;  %v139_v25 = vld [vmem:[%s836_s3 + $0x30] sm:$0xff]  ;;  %v140_v26 = vld [vmem:[%s836_s3 + $0x38] sm:$0xff]  ;;  %v498_v27 = vpack.c.bf16 %v40_v23, %v39_v22  ;;  %v141_v31 = vld [vmem:[%s836_s3 + $0x40] sm:$0xff]  ;;  %vm54_vm4 = vcmask 990208   ;;  %vm227_vm5 = vcmask 523264  }
   0xf   :  { %v41_v28 = vld [vmem:[%s834_s1 + $0x50] sm:$0xff]  ;;  %v42_v29 = vld [vmem:[%s834_s1 + $0x58] sm:$0xff]  ;;  %v520_v30 = vpack.c.bf16 %v140_v26, %v139_v25  ;;  %v142_v32 = vld [vmem:[%s836_s3 + $0x48] sm:$0xff] }
  0x10   :  { %496 = vmatpush3.bf16.msra.mxu0 %v495_v21  ;;  %v501_v33 = vpack.c.bf16 %v42_v29, %v41_v28  ;;  %v43_v34 = vld [vmem:[%s834_s1 + $0x60] sm:$0xff]  ;;  %v44_v35 = vld [vmem:[%s834_s1 + $0x68] sm:$0xff]  ;;  %v523_v36 = vpack.c.bf16 %v142_v32, %v141_v31  ;;  %v143_v37 = vld [vmem:[%s836_s3 + $0x50] sm:$0xff] }
  0x11   :  { %497 = vmatprep.subr.bf16.mxu0 %v600_v3  ;;  %518 = vmatpush3.bf16.msra.mxu1 %v517_v24  ;;  %v144_v38 = vld [vmem:[%s836_s3 + $0x58] sm:$0xff]  ;;  %v504_v39 = vpack.c.bf16 %v44_v35, %v43_v34  ;;  %v45_v40 = vld [vmem:[%s834_s1 + $0x70] sm:$0xff]  ;;  %v145_v43 = vld [vmem:[%s836_s3 + $0x60] sm:$0xff] }
  0x12   :  { %519 = vmatprep.subr.bf16.mxu1 %v600_v3  ;;  %v46_v41 = vld [vmem:[%s834_s1 + $0x78] sm:$0x1]  ;;  %v526_v42 = vpack.c.bf16 %v144_v38, %v143_v37  ;;  %v146_v44 = vld [vmem:[%s836_s3 + $0x68] sm:$0xff]  ;;  %vm508_vm3 = vmpackc.low %vm58_vm1, %vm603_vm2 }
  0x13   :  { %v507_v45 = vpack.c.bf16 %v46_v41, %v45_v40  ;;  %v529_v46 = vpack.c.bf16 %v146_v44, %v145_v43  ;;  %v30_v47 = vld [vmem:[%s833_s0] sm:$0xff]  ;;  %v147_v48 = vld [vmem:[%s836_s3 + $0x70] sm:$0xff]  ;;  %v148_v49 = vld [vmem:[%s836_s3 + $0x78] sm:$0xff] }
  0x14   :  { %499 = vmatpush3.bf16.msra.mxu0 %v498_v27  ;;  %v532_v50 = vpack.c.bf16 %v148_v49, %v147_v48  ;;  %v229_v51 = vld [vmem:[%s838_s5] sm:$0xff]  ;;  %v230_v52 = vld [vmem:[%s838_s5 + $0x8] sm:$0xff]  ;;  %v231_v53 = vld [vmem:[%s838_s5 + $0x10] sm:$0xff] }
  0x15   :  { %500 = vmatprep.subr.bf16.mxu0 %v600_v3  ;;  %521 = vmatpush3.bf16.msra.mxu1 %v520_v30  ;;  %v535_v54 = vpack.c.bf16 %v230_v52, %v229_v51  ;;  %v232_v55 = vld [vmem:[%s838_s5 + $0x18] sm:$0xff]  ;;  %v233_v57 = vld [vmem:[%s838_s5 + $0x20] sm:$0xff]  ;;  %v234_v58 = vld [vmem:[%s838_s5 + $0x28] sm:$0xff] }
  0x16   :  { %522 = vmatprep.subr.bf16.mxu1 %v600_v3  ;;  %v538_v56 = vpack.c.bf16 %v232_v55, %v231_v53  ;;  %v541_v59 = vpack.c.bf16 %v234_v58, %v233_v57  ;;  %v347_v60 = vld [vmem:[%s835_s2] ss:$0 sm:$0xff]  ;;  %v235_v1 = vld [vmem:[%s838_s5 + $0x30] sm:$0xff]  ;;  %v236_v2 = vld [vmem:[%s838_s5 + $0x38] sm:$0xff]  ;;  %s604_s2 = smov [#allocation2]  }
  0x17   :  { %v544_v4 = vpack.c.bf16 %v236_v2, %v235_v1  ;;  %s325_s21 = sshll.u32 %s604_s2, 4  ;;  %s326_s21 = int_to_ptr.vmem [resolvable:$true] %s325_s21 }
  0x18   :  { %502 = vmatpush3.bf16.msra.mxu0 %v501_v33  ;;  %s552_s22 = scalar_lea.vmem %s326_s21, 128  ;;  %p557_p1 = scmp.lt.s32.totalorder %s326_s21, %s326_s21 }
  0x19   :  { %503 = vmatprep.subr.bf16.mxu0 %v600_v3  ;;  %524 = vmatpush3.bf16.msra.mxu1 %v523_v36  ;;  %p553_p0 = scmp.ne.s32.totalorder %s326_s21, %s552_s22  ;;  %p558_p2 = scmp.lt.s32.totalorder %s552_s22, %s552_s22 }
  0x1a   :  { %525 = vmatprep.subr.bf16.mxu1 %v600_v3 }
  0x1b   :  { %p559_p3 = por %p558_p2, %p557_p1 }
  0x1c   :  { %505 = vmatpush3.bf16.msra.mxu0 %v504_v39 }
  0x1d   :  { %506 = vmatprep.subr.bf16.mxu0 %v600_v3  ;;  %527 = vmatpush3.bf16.msra.mxu1 %v526_v42  ;;  %p560_p4 = pnand %p559_p3, %p553_p0 }
  0x1e   :  { %528 = vmatprep.subr.bf16.mxu1 %v600_v3 }
  0x20   :  { %509 = vmatpush3.bf16.msk.msra.mxu0 %vm508_vm3, %v507_v45 }
  0x21   :  { %534 = vmatprep.subr.bf16.mxu0 %v600_v3  ;;  %530 = vmatpush3.bf16.msra.mxu1 %v529_v46 }
  0x22   :  { %531 = vmatprep.subr.bf16.mxu1 %v600_v3 }
  0x23   :  { %429 = vmatmul.mubr.msk.f32.vlgmr.msra.gmra.mrb[0].mxu0 %vm54_vm4, %v30_v47 }
  0x24   :  { %482 = vmatprep.mubr.msk.f32.mxu0 %vm601_vm0, %v602_v6  ;;  %536 = vmatpush3.bf16.msra.mxu0 %v535_v54 }
  0x25   :  { %533 = vmatpush3.bf16.msra.mxu1 %v532_v50  ;;  %537 = vmatprep.subr.bf16.mxu0 %v600_v3 }
  0x28   :  { %539 = vmatpush3.bf16.msra.mxu0 %v538_v56 }
  0x29   :  { %540 = vmatprep.subr.bf16.mxu0 %v600_v3 }
  0x2c   :  { %542 = vmatpush3.bf16.msra.mxu0 %v541_v59 }
  0x2d   :  { %543 = vmatprep.subr.bf16.mxu0 %v600_v3  ;;  %v350_v3 = vld [vmem:[%s837_s4] ss:$0 sm:$0xff] }
  0x30   :  { %545 = vmatpush3.bf16.msra.mxu0 %v544_v4 }
  0xf6   :  { %v128_v61 = vpop.f32.mrb[0].mxu0 }
  0xf7   :  { %v129_v62 = vadd.f32 %v347_v60, %v128_v61  ;;  %v430_v63 = vpop.f32.mrb[1].mxu0 }
  0xf9   :  { %v132_v0 = vmax.f32 %v129_v62, 0.0 }
  0xfb   :  { %464 = vmatmul.mubr.f32.vlgmr.msra.gmra.mrb[0].mxu1 %v132_v0 }
 0x1ce   :  { %v222_v5 = vpop.f32.mrb[0].mxu1 }
 0x1cf   :  { %v223_v6 = vadd.f32 %v350_v3, %v222_v5  ;;  %v465_v7 = vpop.f32.mrb[1].mxu1 }
 0x1d1   :  { %v226_v8 = vmax.f32 %v223_v6, 0.0 }
 0x1d3   :  { %483 = vmatmul.mubr.msk.f32.vlgmr.msra.gmra.mrb[2].mxu0 %vm227_vm5, %v226_v8  ;;  %228 = vst.msk [vmem:[#allocation2] sm:$0xff] %vm227_vm5, %v226_v8 }
 0x1d4   :  { %563 = shalt.err (!%p560_p4)
}
 0x1d5   :  { %s564_s4 = scalar_lea.hbm %s840_s7, 128 }
 0x1d6   :  { %p565_p5 = scmp.ne.s32.totalorder %s840_s7, %s564_s4  ;;  %p568_p6 = scmp.lt.u32.totalorder %s564_s4, %s840_s7 }
 0x1d8   :  { %p570_p7 = pnand %p568_p6, %p565_p5 }
 0x1da   :  { %573 = shalt.err (!%p570_p7)
}
 0x1db   :  { %328 = dma.vmem_to_hbm [thread:$0]  %s326_s21, 128, %s840_s7, [#allocation3]   ;;  %v351_v9 = vld [vmem:[%s839_s6] ss:$0 sm:$0xff]  ;;  %vm317_vm6 = vcmask 80896  }
 0x1dc   :  { %s605_s9 = smov [#allocation4]  }
 0x1dd   :  { %s335_s10 = sshll.u32 %s605_s9, 4  ;;  %s336_s10 = int_to_ptr.vmem [resolvable:$true] %s335_s10 }
 0x1de   :  { %s574_s3 = scalar_lea.vmem %s336_s10, 128  ;;  %p579_p9 = scmp.lt.s32.totalorder %s336_s10, %s336_s10 }
 0x1df   :  { %p575_p8 = scmp.ne.s32.totalorder %s336_s10, %s574_s3  ;;  %p580_p10 = scmp.lt.s32.totalorder %s574_s3, %s574_s3 }
 0x1e1   :  { %p581_p11 = por %p580_p10, %p579_p9 }
 0x1e3   :  { %p582_p12 = pnand %p581_p11, %p575_p8 }
 0x2a6   :  { %v313_v10 = vpop.f32.mrb[2].mxu0 }
 0x2a7   :  { %v314_v11 = vadd.f32 %v351_v9, %v313_v10  ;;  %v484_v12 = vpop.f32.mrb[3].mxu0 }
 0x2a9   :  { %318 = vst.msk [vmem:[#allocation4] sm:$0xff] %vm317_vm6, %v314_v11 }
 0x2aa   :  { %585 = shalt.err (!%p582_p12)
}
 0x2ab   :  { %s586_s12 = scalar_lea.hbm %s841_s8, 128 }
 0x2ac   :  { %p587_p13 = scmp.ne.s32.totalorder %s841_s8, %s586_s12  ;;  %p590_p0 = scmp.lt.u32.totalorder %s586_s12, %s841_s8 }
 0x2ae   :  { %p592_p1 = pnand %p590_p0, %p587_p13 }
 0x2b0   :  { %595 = shalt.err (!%p592_p1)
}
 0x2b1   :  { %338 = dma.vmem_to_hbm [thread:$0]  %s336_s10, 128, %s841_s8, [#allocation5]  }
 0x2b2   :  { %596 = dma.done.wait [#allocation3], 128  }
 0x2b3   :  { %597 = vsyncadd [#allocation3], 4294967168 }
 0x2b4   :  { %598 = dma.done.wait [#allocation5], 128  }
 0x2b5   :  { %599 = vsyncadd [#allocation5], 4294967168 }
 0x2b6   :  { %345 = vsyncpa [#allocation3], 1 }
 0x2b7   :  { %346 = vsyncpa [#allocation5], 1 }

</bundles_post_ra>
